<compile_context>
chip_gen: v5e
topology: v5e:2x2
jax: 0.10.0
libtpu: 0.0.40
codegen_flags: <defaults>
</compile_context>

<pallas_src>
import functools

import numpy as np
import jax
import jax.numpy as jnp
from jax.experimental import pallas as pl
from jax.experimental.pallas import tpu as pltpu


def _exclusive_prefix_sum_last(x):
    """Exclusive prefix sum along the last (lane) axis via log-step roll+add."""
    n = x.shape[-1]
    axis = x.ndim - 1
    lane = jax.lax.broadcasted_iota(jnp.int32, x.shape, axis)
    s = x
    shift = 1
    while shift < n:  # static unroll: ceil(log2(n)) steps
        rolled = pltpu.roll(s, shift=shift, axis=axis)
        # mask circularly-wrapped lanes (lane < shift)
        s = s + jnp.where(lane >= shift, rolled, 0.0)
        shift *= 2
    return s - x  # inclusive -> exclusive


def _msece_kernel(stacked_ref, labels_ref, num_ref, min_ref, *,
                  num_class, n_bins, c_chunk):
    R_SUB, M = labels_ref.shape              # (8, M), M = Np // 8
    nbf = jnp.float32(n_bins)
    chunk_off = pl.program_id(0) * c_chunk   # first class id handled by this step

    conf = stacked_ref[0]                    # (8, M) f32
    hits = stacked_ref[1]                    # (8, M) f32
    labels = labels_ref[...]                 # (8, M) i32 (padding carries -1)

    # ---- per-class membership for this chunk of classes --------------------
    cls3 = jax.lax.broadcasted_iota(jnp.int32, (c_chunk, R_SUB, M), 0) + chunk_off
    onehot3 = (labels[None, :, :] == cls3).astype(jnp.float32)       # (Cc, 8, M)

    # ---- within-class exclusive rank, two-level (exact integer arithmetic) -
    intra = _exclusive_prefix_sum_last(onehot3)                      # per row
    rowsum3 = jnp.sum(onehot3, axis=2, keepdims=True)                # (Cc, 8, 1)
    row_iota = jax.lax.broadcasted_iota(jnp.int32, (c_chunk, R_SUB, 1), 1)
    carry3 = jnp.zeros_like(rowsum3)
    for rp in range(R_SUB - 1):              # unrolled 7-term row carry (tiny)
        carry3 = carry3 + jnp.where(row_iota > rp, rowsum3[:, rp:rp + 1, :], 0.0)
    ex_rank3 = intra + carry3                                        # (Cc, 8, M)

    count3 = jnp.sum(rowsum3, axis=1, keepdims=True)                 # (Cc, 1, 1)
    mass3 = jnp.floor(count3 / nbf)          # == count // n_bins (counts << 2^24)

    # ---- collapse to per-element (each element matches <= 1 chunk class) ---
    rank_e = jnp.sum(onehot3 * ex_rank3, axis=0)                     # (8, M)
    mass_e = jnp.sum(onehot3 * mass3, axis=0)                        # (8, M)
    valid0 = mass_e > 0.5
    safe_mass_e = jnp.where(valid0, mass_e, 1.0)
    # exact f32 divide (NOT approx reciprocal): bin boundaries must be exact
    bin_e = (rank_e / safe_mass_e).astype(jnp.int32)                 # (8, M)
    valid = jnp.logical_and(valid0, bin_e < n_bins)
    diffm = jnp.where(valid, conf - hits, 0.0)                       # (8, M)

    # ---- per-(class, bin) sums on the MXU ----------------------------------
    cls2 = jax.lax.broadcasted_iota(jnp.int32, (c_chunk, M), 0) + chunk_off
    bin2 = jax.lax.broadcasted_iota(jnp.int32, (n_bins, M), 0)
    s_cb = jnp.zeros((c_chunk, n_bins), jnp.float32)
    cnt = jnp.zeros((c_chunk, 1), jnp.float32)
    for r in range(R_SUB):                   # 8 sublane rows, one matmul each
        oh_r = (labels[r:r + 1, :] == cls2).astype(jnp.float32)      # (Cc, M)
        b_r = jnp.where(bin2 == bin_e[r:r + 1, :], diffm[r:r + 1, :], 0.0)  # (NB, M)
        s_cb = s_cb + jax.lax.dot_general(
            oh_r, b_r, (((1,), (1,)), ((), ())),
            preferred_element_type=jnp.float32)                      # (Cc, NB)
        cnt = cnt + jnp.sum(oh_r, axis=1, keepdims=True)             # (Cc, 1)

    # ---- hoisted 1/mass scaling + per-chunk partials ------------------------
    mass_col = jnp.floor(cnt / nbf)                                  # (Cc, 1)
    safe_col = jnp.maximum(mass_col, 1.0)
    rowabs = jnp.sum(jnp.abs(s_cb), axis=1, keepdims=True)           # (Cc, 1)
    partial_num = jnp.sum(rowabs / safe_col)   # sum_c sum_b |mean conf - mean hit|

    cid = jax.lax.broadcasted_iota(jnp.int32, (c_chunk, 1), 0) + chunk_off
    cnt_min = jnp.min(jnp.where(cid < num_class, cnt, jnp.inf))      # chunk min count

    num_ref[...] = jnp.full((8, 128), partial_num, jnp.float32)
    min_ref[...] = jnp.full((8, 128), cnt_min, jnp.float32)


def msece(confidences, hits, labels, *, num_class, n_bins=15, num_class_chunks=2):
    """Pallas wrapper. confidences/hits: (N,) float, labels: (N,) int."""
    N = confidences.shape[0]
    R_SUB, LANE = 8, 128
    M = pl.cdiv(N, R_SUB * LANE) * LANE          # lanes per sublane row
    Np = R_SUB * M
    pad = Np - N
    conf2 = jnp.pad(confidences.astype(jnp.float32), (0, pad)).reshape(R_SUB, M)
    hits2 = jnp.pad(hits.astype(jnp.float32), (0, pad)).reshape(R_SUB, M)
    stacked = jnp.stack([conf2, hits2], axis=0)                      # (2, 8, M)
    # sentinel label -1: padded elements match no class, never enter any bin
    lab2 = jnp.pad(labels.astype(jnp.int32), (0, pad),
                   constant_values=-1).reshape(R_SUB, M)

    chunks = max(1, min(int(num_class_chunks), num_class))
    c_chunk = pl.cdiv(num_class, chunks)
    num_chunks = pl.cdiv(num_class, c_chunk)

    # VMEM budget gated on actual chip capacity: 128 MiB parts (v5e/v6e) may go
    # to ~100 MiB; 64 MiB parts (v7x) are capped at 48 MiB for headroom.
    try:
        vmem_cap = int(getattr(pltpu.get_tpu_info(), "vmem_capacity_bytes",
                               64 * 2**20))
    except Exception:  # pragma: no cover - conservative fallback
        vmem_cap = 64 * 2**20
    cap = 100 * 2**20 if vmem_cap >= 128 * 2**20 else 48 * 2**20
    est = 4 * Np * (16 + 5 * c_chunk) + 4 * M * (n_bins + c_chunk + 4)
    vmem_limit = int(min(cap, max(32 * 2**20, 2 * est)))

    kernel = functools.partial(_msece_kernel, num_class=num_class,
                               n_bins=n_bins, c_chunk=c_chunk)
    out_num, out_min = pl.pallas_call(
        kernel,
        grid=(num_chunks,),
        in_specs=[
            pl.BlockSpec((2, R_SUB, M), lambda i: (0, 0, 0)),
            pl.BlockSpec((R_SUB, M), lambda i: (0, 0)),
        ],
        out_specs=[
            pl.BlockSpec((8, 128), lambda i: (i, 0)),
            pl.BlockSpec((8, 128), lambda i: (i, 0)),
        ],
        out_shape=[
            jax.ShapeDtypeStruct((num_chunks * 8, 128), jnp.float32),
            jax.ShapeDtypeStruct((num_chunks * 8, 128), jnp.float32),
        ],
        compiler_params=pltpu.CompilerParams(
            dimension_semantics=("parallel",),   # class chunks split across cores
            vmem_limit_bytes=vmem_limit),
    )(stacked, lab2)

    partial_num = out_num.reshape(num_chunks, 8, 128)[:, 0, 0]
    partial_min = out_min.reshape(num_chunks, 8, 128)[:, 0, 0]
    finite = jnp.sum(partial_num) / (n_bins * num_class)
    # torch semantics: any class with count // n_bins == 0 -> mean of empty -> NaN
    return jnp.where(jnp.min(partial_min) < n_bins, jnp.float32(jnp.nan), finite)


def msece_numpy_ref(conf, hits, labels, num_class, n_bins=15):
    """Direct transcription of the PyTorch forward (numpy)."""
    cece_numerator = 0.0
    for c in range(num_class):
        idx = labels == c
        cc = conf[idx]
        ch = hits[idx]
        m = len(cc) // n_bins
        ece = 0.0
        for b in range(n_bins):
            ps = cc[b * m:(b + 1) * m].mean()
            acc = ch[b * m:(b + 1) * m].mean()
            ece += np.abs(ps - acc) / n_bins
        cece_numerator += ece
    return cece_numerator / num_class


if __name__ == "__main__":
    NUM_CLASS = 4
    N_BINS = 15
    N = 480  # plenty of samples so every class has >= n_bins elements

    key = jax.random.PRNGKey(0)
    k1, k2, k3 = jax.random.split(key, 3)
    labels = jax.random.randint(k1, (N,), 0, NUM_CLASS, dtype=jnp.int32)
    confidences = jax.random.uniform(k2, (N,), dtype=jnp.float32)
    hits = (jax.random.uniform(k3, (N,), dtype=jnp.float32)
            < confidences).astype(jnp.float32)

    result = msece(confidences, hits, labels, num_class=NUM_CLASS, n_bins=N_BINS)
    result = jax.block_until_ready(result)

    ref = msece_numpy_ref(np.asarray(confidences), np.asarray(hits),
                          np.asarray(labels), NUM_CLASS, N_BINS)

    assert np.allclose(float(result), ref, rtol=1e-4, atol=1e-5), (
        f"kernel={float(result)} ref={ref}")
    print("KERNEL_OK")
</pallas_src>

<mosaic_0001>
module attributes {stable_mosaic.version = 11 : i64} {
  func.func @_msece_kernel(%arg0: i32, %arg1: memref<2x8x128xf32, #tpu.memory_space<vmem>>, %arg2: memref<8x128xi32, #tpu.memory_space<vmem>>, %arg3: memref<8x128xf32, #tpu.memory_space<vmem>>, %arg4: memref<8x128xf32, #tpu.memory_space<vmem>>) attributes {dimension_semantics = [#tpu.dimension_semantics<parallel>], iteration_bounds = array<i64: 2>, scalar_prefetch = 0 : i64, scratch_operands = 0 : i64, tpu.core_type = #tpu.core_type<tc>, window_params = [{pipeline_mode = #tpu.pipeline_mode<synchronous>, transform_indices = @transform_0, window_bounds = array<i64: 2, 8, 128>}, {pipeline_mode = #tpu.pipeline_mode<synchronous>, transform_indices = @transform_1, window_bounds = array<i64: 8, 128>}, {transform_indices = @transform_2, window_bounds = array<i64: 8, 128>}, {transform_indices = @transform_3, window_bounds = array<i64: 8, 128>}]} {
    %c2_i32 = arith.constant 2 : i32
    %0 = arith.muli %arg0, %c2_i32 : i32
    %c0 = arith.constant 0 : index
    %c0_0 = arith.constant 0 : index
    %c0_1 = arith.constant 0 : index
    %1 = vector.load %arg1[%c0, %c0_0, %c0_1] : memref<2x8x128xf32, #tpu.memory_space<vmem>>, vector<1x8x128xf32>
    %2 = vector.shape_cast %1 : vector<1x8x128xf32> to vector<8x128xf32>
    %c1 = arith.constant 1 : index
    %c0_2 = arith.constant 0 : index
    %c0_3 = arith.constant 0 : index
    %3 = vector.load %arg1[%c1, %c0_2, %c0_3] : memref<2x8x128xf32, #tpu.memory_space<vmem>>, vector<1x8x128xf32>
    %4 = vector.shape_cast %3 : vector<1x8x128xf32> to vector<8x128xf32>
    %c0_4 = arith.constant 0 : index
    %c0_5 = arith.constant 0 : index
    %5 = vector.load %arg2[%c0_4, %c0_5] : memref<8x128xi32, #tpu.memory_space<vmem>>, vector<8x128xi32>
    %6 = tpu.iota {dimensions = array<i32: 0>} : vector<2x8x128xi32>
    %7 = vector.broadcast %0 : i32 to vector<2x8x128xi32>
    %8 = arith.addi %6, %7 : vector<2x8x128xi32>
    %9 = vector.shape_cast %5 : vector<8x128xi32> to vector<1x8x128xi32>
    %10 = vector.broadcast %9 : vector<1x8x128xi32> to vector<2x8x128xi32>
    %11 = arith.cmpi eq, %10, %8 : vector<2x8x128xi32>
    %12 = arith.extui %11 : vector<2x8x128xi1> to vector<2x8x128xi32>
    %13 = arith.sitofp %12 : vector<2x8x128xi32> to vector<2x8x128xf32>
    %14 = tpu.iota {dimensions = array<i32: 2>} : vector<2x8x128xi32>
    %c1_i32 = arith.constant 1 : i32
    %15 = tpu.dynamic_rotate %13 by %c1_i32 dim 2 : vector<2x8x128xf32>, i32 -> vector<2x8x128xf32>
    %c1_i32_6 = arith.constant 1 : i32
    %16 = vector.broadcast %c1_i32_6 : i32 to vector<2x8x128xi32>
    %17 = arith.cmpi sge, %14, %16 : vector<2x8x128xi32>
    %cst = arith.constant 0.000000e+00 : f32
    %18 = vector.broadcast %cst : f32 to vector<2x8x128xf32>
    %19 = arith.select %17, %15, %18 : vector<2x8x128xi1>, vector<2x8x128xf32>
    %20 = arith.addf %13, %19 : vector<2x8x128xf32>
    %c2_i32_7 = arith.constant 2 : i32
    %21 = tpu.dynamic_rotate %20 by %c2_i32_7 dim 2 : vector<2x8x128xf32>, i32 -> vector<2x8x128xf32>
    %c2_i32_8 = arith.constant 2 : i32
    %22 = vector.broadcast %c2_i32_8 : i32 to vector<2x8x128xi32>
    %23 = arith.cmpi sge, %14, %22 : vector<2x8x128xi32>
    %cst_9 = arith.constant 0.000000e+00 : f32
    %24 = vector.broadcast %cst_9 : f32 to vector<2x8x128xf32>
    %25 = arith.select %23, %21, %24 : vector<2x8x128xi1>, vector<2x8x128xf32>
    %26 = arith.addf %20, %25 : vector<2x8x128xf32>
    %c4_i32 = arith.constant 4 : i32
    %27 = tpu.dynamic_rotate %26 by %c4_i32 dim 2 : vector<2x8x128xf32>, i32 -> vector<2x8x128xf32>
    %c4_i32_10 = arith.constant 4 : i32
    %28 = vector.broadcast %c4_i32_10 : i32 to vector<2x8x128xi32>
    %29 = arith.cmpi sge, %14, %28 : vector<2x8x128xi32>
    %cst_11 = arith.constant 0.000000e+00 : f32
    %30 = vector.broadcast %cst_11 : f32 to vector<2x8x128xf32>
    %31 = arith.select %29, %27, %30 : vector<2x8x128xi1>, vector<2x8x128xf32>
    %32 = arith.addf %26, %31 : vector<2x8x128xf32>
    %c8_i32 = arith.constant 8 : i32
    %33 = tpu.dynamic_rotate %32 by %c8_i32 dim 2 : vector<2x8x128xf32>, i32 -> vector<2x8x128xf32>
    %c8_i32_12 = arith.constant 8 : i32
    %34 = vector.broadcast %c8_i32_12 : i32 to vector<2x8x128xi32>
    %35 = arith.cmpi sge, %14, %34 : vector<2x8x128xi32>
    %cst_13 = arith.constant 0.000000e+00 : f32
    %36 = vector.broadcast %cst_13 : f32 to vector<2x8x128xf32>
    %37 = arith.select %35, %33, %36 : vector<2x8x128xi1>, vector<2x8x128xf32>
    %38 = arith.addf %32, %37 : vector<2x8x128xf32>
    %c16_i32 = arith.constant 16 : i32
    %39 = tpu.dynamic_rotate %38 by %c16_i32 dim 2 : vector<2x8x128xf32>, i32 -> vector<2x8x128xf32>
    %c16_i32_14 = arith.constant 16 : i32
    %40 = vector.broadcast %c16_i32_14 : i32 to vector<2x8x128xi32>
    %41 = arith.cmpi sge, %14, %40 : vector<2x8x128xi32>
    %cst_15 = arith.constant 0.000000e+00 : f32
    %42 = vector.broadcast %cst_15 : f32 to vector<2x8x128xf32>
    %43 = arith.select %41, %39, %42 : vector<2x8x128xi1>, vector<2x8x128xf32>
    %44 = arith.addf %38, %43 : vector<2x8x128xf32>
    %c32_i32 = arith.constant 32 : i32
    %45 = tpu.dynamic_rotate %44 by %c32_i32 dim 2 : vector<2x8x128xf32>, i32 -> vector<2x8x128xf32>
    %c32_i32_16 = arith.constant 32 : i32
    %46 = vector.broadcast %c32_i32_16 : i32 to vector<2x8x128xi32>
    %47 = arith.cmpi sge, %14, %46 : vector<2x8x128xi32>
    %cst_17 = arith.constant 0.000000e+00 : f32
    %48 = vector.broadcast %cst_17 : f32 to vector<2x8x128xf32>
    %49 = arith.select %47, %45, %48 : vector<2x8x128xi1>, vector<2x8x128xf32>
    %50 = arith.addf %44, %49 : vector<2x8x128xf32>
    %c64_i32 = arith.constant 64 : i32
    %51 = tpu.dynamic_rotate %50 by %c64_i32 dim 2 : vector<2x8x128xf32>, i32 -> vector<2x8x128xf32>
    %c64_i32_18 = arith.constant 64 : i32
    %52 = vector.broadcast %c64_i32_18 : i32 to vector<2x8x128xi32>
    %53 = arith.cmpi sge, %14, %52 : vector<2x8x128xi32>
    %cst_19 = arith.constant 0.000000e+00 : f32
    %54 = vector.broadcast %cst_19 : f32 to vector<2x8x128xf32>
    %55 = arith.select %53, %51, %54 : vector<2x8x128xi1>, vector<2x8x128xf32>
    %56 = arith.addf %50, %55 : vector<2x8x128xf32>
    %57 = arith.subf %56, %13 : vector<2x8x128xf32>
    %cst_20 = arith.constant dense<0.000000e+00> : vector<2x8xf32>
    %58 = vector.multi_reduction <add>, %13, %cst_20 [2] : vector<2x8x128xf32> to vector<2x8xf32>
    %59 = vector.shape_cast %58 : vector<2x8xf32> to vector<2x8x1xf32>
    %60 = tpu.iota {dimensions = array<i32: 1>} : vector<2x8x1xi32>
    %cst_21 = arith.constant 0.000000e+00 : f32
    %61 = vector.broadcast %cst_21 : f32 to vector<2x8x1xf32>
    %c0_i32 = arith.constant 0 : i32
    %62 = vector.broadcast %c0_i32 : i32 to vector<2x8x1xi32>
    %63 = arith.cmpi sgt, %60, %62 : vector<2x8x1xi32>
    %64 = vector.extract_strided_slice %59 {offsets = [0, 0, 0], sizes = [2, 1, 1], strides = [1, 1, 1]} : vector<2x8x1xf32> to vector<2x1x1xf32>
    %cst_22 = arith.constant 0.000000e+00 : f32
    %65 = vector.shape_cast %64 : vector<2x1x1xf32> to vector<2x1x1xf32>
    %66 = vector.broadcast %65 : vector<2x1x1xf32> to vector<2x8x1xf32>
    %67 = vector.broadcast %cst_22 : f32 to vector<2x8x1xf32>
    %68 = arith.select %63, %66, %67 : vector<2x8x1xi1>, vector<2x8x1xf32>
    %69 = arith.addf %61, %68 : vector<2x8x1xf32>
    %c1_i32_23 = arith.constant 1 : i32
    %70 = vector.broadcast %c1_i32_23 : i32 to vector<2x8x1xi32>
    %71 = arith.cmpi sgt, %60, %70 : vector<2x8x1xi32>
    %72 = vector.extract_strided_slice %59 {offsets = [0, 1, 0], sizes = [2, 1, 1], strides = [1, 1, 1]} : vector<2x8x1xf32> to vector<2x1x1xf32>
    %cst_24 = arith.constant 0.000000e+00 : f32
    %73 = vector.shape_cast %72 : vector<2x1x1xf32> to vector<2x1x1xf32>
    %74 = vector.broadcast %73 : vector<2x1x1xf32> to vector<2x8x1xf32>
    %75 = vector.broadcast %cst_24 : f32 to vector<2x8x1xf32>
    %76 = arith.select %71, %74, %75 : vector<2x8x1xi1>, vector<2x8x1xf32>
    %77 = arith.addf %69, %76 : vector<2x8x1xf32>
    %c2_i32_25 = arith.constant 2 : i32
    %78 = vector.broadcast %c2_i32_25 : i32 to vector<2x8x1xi32>
    %79 = arith.cmpi sgt, %60, %78 : vector<2x8x1xi32>
    %80 = vector.extract_strided_slice %59 {offsets = [0, 2, 0], sizes = [2, 1, 1], strides = [1, 1, 1]} : vector<2x8x1xf32> to vector<2x1x1xf32>
    %cst_26 = arith.constant 0.000000e+00 : f32
    %81 = vector.shape_cast %80 : vector<2x1x1xf32> to vector<2x1x1xf32>
    %82 = vector.broadcast %81 : vector<2x1x1xf32> to vector<2x8x1xf32>
    %83 = vector.broadcast %cst_26 : f32 to vector<2x8x1xf32>
    %84 = arith.select %79, %82, %83 : vector<2x8x1xi1>, vector<2x8x1xf32>
    %85 = arith.addf %77, %84 : vector<2x8x1xf32>
    %c3_i32 = arith.constant 3 : i32
    %86 = vector.broadcast %c3_i32 : i32 to vector<2x8x1xi32>
    %87 = arith.cmpi sgt, %60, %86 : vector<2x8x1xi32>
    %88 = vector.extract_strided_slice %59 {offsets = [0, 3, 0], sizes = [2, 1, 1], strides = [1, 1, 1]} : vector<2x8x1xf32> to vector<2x1x1xf32>
    %cst_27 = arith.constant 0.000000e+00 : f32
    %89 = vector.shape_cast %88 : vector<2x1x1xf32> to vector<2x1x1xf32>
    %90 = vector.broadcast %89 : vector<2x1x1xf32> to vector<2x8x1xf32>
    %91 = vector.broadcast %cst_27 : f32 to vector<2x8x1xf32>
    %92 = arith.select %87, %90, %91 : vector<2x8x1xi1>, vector<2x8x1xf32>
    %93 = arith.addf %85, %92 : vector<2x8x1xf32>
    %c4_i32_28 = arith.constant 4 : i32
    %94 = vector.broadcast %c4_i32_28 : i32 to vector<2x8x1xi32>
    %95 = arith.cmpi sgt, %60, %94 : vector<2x8x1xi32>
    %96 = vector.extract_strided_slice %59 {offsets = [0, 4, 0], sizes = [2, 1, 1], strides = [1, 1, 1]} : vector<2x8x1xf32> to vector<2x1x1xf32>
    %cst_29 = arith.constant 0.000000e+00 : f32
    %97 = vector.shape_cast %96 : vector<2x1x1xf32> to vector<2x1x1xf32>
    %98 = vector.broadcast %97 : vector<2x1x1xf32> to vector<2x8x1xf32>
    %99 = vector.broadcast %cst_29 : f32 to vector<2x8x1xf32>
    %100 = arith.select %95, %98, %99 : vector<2x8x1xi1>, vector<2x8x1xf32>
    %101 = arith.addf %93, %100 : vector<2x8x1xf32>
    %c5_i32 = arith.constant 5 : i32
    %102 = vector.broadcast %c5_i32 : i32 to vector<2x8x1xi32>
    %103 = arith.cmpi sgt, %60, %102 : vector<2x8x1xi32>
    %104 = vector.extract_strided_slice %59 {offsets = [0, 5, 0], sizes = [2, 1, 1], strides = [1, 1, 1]} : vector<2x8x1xf32> to vector<2x1x1xf32>
    %cst_30 = arith.constant 0.000000e+00 : f32
    %105 = vector.shape_cast %104 : vector<2x1x1xf32> to vector<2x1x1xf32>
    %106 = vector.broadcast %105 : vector<2x1x1xf32> to vector<2x8x1xf32>
    %107 = vector.broadcast %cst_30 : f32 to vector<2x8x1xf32>
    %108 = arith.select %103, %106, %107 : vector<2x8x1xi1>, vector<2x8x1xf32>
    %109 = arith.addf %101, %108 : vector<2x8x1xf32>
    %c6_i32 = arith.constant 6 : i32
    %110 = vector.broadcast %c6_i32 : i32 to vector<2x8x1xi32>
    %111 = arith.cmpi sgt, %60, %110 : vector<2x8x1xi32>
    %112 = vector.extract_strided_slice %59 {offsets = [0, 6, 0], sizes = [2, 1, 1], strides = [1, 1, 1]} : vector<2x8x1xf32> to vector<2x1x1xf32>
    %cst_31 = arith.constant 0.000000e+00 : f32
    %113 = vector.shape_cast %112 : vector<2x1x1xf32> to vector<2x1x1xf32>
    %114 = vector.broadcast %113 : vector<2x1x1xf32> to vector<2x8x1xf32>
    %115 = vector.broadcast %cst_31 : f32 to vector<2x8x1xf32>
    %116 = arith.select %111, %114, %115 : vector<2x8x1xi1>, vector<2x8x1xf32>
    %117 = arith.addf %109, %116 : vector<2x8x1xf32>
    %118 = vector.broadcast %117 : vector<2x8x1xf32> to vector<2x8x128xf32>
    %119 = arith.addf %57, %118 : vector<2x8x128xf32>
    %cst_32 = arith.constant dense<0.000000e+00> : vector<2x1xf32>
    %120 = vector.multi_reduction <add>, %59, %cst_32 [1] : vector<2x8x1xf32> to vector<2x1xf32>
    %121 = vector.shape_cast %120 : vector<2x1xf32> to vector<2x1x1xf32>
    %cst_33 = arith.constant 1.500000e+01 : f32
    %122 = vector.broadcast %cst_33 : f32 to vector<2x1x1xf32>
    %123 = arith.divf %121, %122 : vector<2x1x1xf32>
    %124 = math.floor %123 : vector<2x1x1xf32>
    %125 = arith.mulf %13, %119 : vector<2x8x128xf32>
    %cst_34 = arith.constant dense<0.000000e+00> : vector<8x128xf32>
    %126 = vector.multi_reduction <add>, %125, %cst_34 [0] : vector<2x8x128xf32> to vector<8x128xf32>
    %127 = vector.broadcast %124 : vector<2x1x1xf32> to vector<2x8x128xf32>
    %128 = arith.mulf %13, %127 : vector<2x8x128xf32>
    %cst_35 = arith.constant dense<0.000000e+00> : vector<8x128xf32>
    %129 = vector.multi_reduction <add>, %128, %cst_35 [0] : vector<2x8x128xf32> to vector<8x128xf32>
    %cst_36 = arith.constant 5.000000e-01 : f32
    %130 = vector.broadcast %cst_36 : f32 to vector<8x128xf32>
    %131 = arith.cmpf ogt, %129, %130 : vector<8x128xf32>
    %cst_37 = arith.constant 1.000000e+00 : f32
    %132 = vector.broadcast %cst_37 : f32 to vector<8x128xf32>
    %133 = arith.select %131, %129, %132 : vector<8x128xi1>, vector<8x128xf32>
    %134 = arith.divf %126, %133 : vector<8x128xf32>
    %135 = arith.fptosi %134 : vector<8x128xf32> to vector<8x128xi32>
    %c15_i32 = arith.constant 15 : i32
    %136 = vector.broadcast %c15_i32 : i32 to vector<8x128xi32>
    %137 = arith.cmpi slt, %135, %136 : vector<8x128xi32>
    %138 = arith.andi %131, %137 : vector<8x128xi1>
    %139 = arith.subf %2, %4 : vector<8x128xf32>
    %cst_38 = arith.constant 0.000000e+00 : f32
    %140 = vector.broadcast %cst_38 : f32 to vector<8x128xf32>
    %141 = arith.select %138, %139, %140 : vector<8x128xi1>, vector<8x128xf32>
    %142 = tpu.iota {dimensions = array<i32: 0>} : vector<2x128xi32>
    %143 = vector.broadcast %0 : i32 to vector<2x128xi32>
    %144 = arith.addi %142, %143 : vector<2x128xi32>
    %145 = tpu.iota {dimensions = array<i32: 0>} : vector<15x128xi32>
    %cst_39 = arith.constant 0.000000e+00 : f32
    %146 = vector.broadcast %cst_39 : f32 to vector<2x15xf32>
    %cst_40 = arith.constant 0.000000e+00 : f32
    %147 = vector.broadcast %cst_40 : f32 to vector<2x1xf32>
    %148 = vector.extract_strided_slice %5 {offsets = [0, 0], sizes = [1, 128], strides = [1, 1]} : vector<8x128xi32> to vector<1x128xi32>
    %149 = vector.broadcast %148 : vector<1x128xi32> to vector<2x128xi32>
    %150 = arith.cmpi eq, %149, %144 : vector<2x128xi32>
    %151 = arith.extui %150 : vector<2x128xi1> to vector<2x128xi32>
    %152 = arith.sitofp %151 : vector<2x128xi32> to vector<2x128xf32>
    %153 = vector.extract_strided_slice %135 {offsets = [0, 0], sizes = [1, 128], strides = [1, 1]} : vector<8x128xi32> to vector<1x128xi32>
    %154 = vector.broadcast %153 : vector<1x128xi32> to vector<15x128xi32>
    %155 = arith.cmpi eq, %145, %154 : vector<15x128xi32>
    %156 = vector.extract_strided_slice %141 {offsets = [0, 0], sizes = [1, 128], strides = [1, 1]} : vector<8x128xf32> to vector<1x128xf32>
    %cst_41 = arith.constant 0.000000e+00 : f32
    %157 = vector.shape_cast %156 : vector<1x128xf32> to vector<1x128xf32>
    %158 = vector.broadcast %157 : vector<1x128xf32> to vector<15x128xf32>
    %159 = vector.broadcast %cst_41 : f32 to vector<15x128xf32>
    %160 = arith.select %155, %158, %159 : vector<15x128xi1>, vector<15x128xf32>
    %cst_42 = arith.constant dense<0.000000e+00> : vector<2x15xf32>
    %161 = tpu.matmul %152, %160, %cst_42 {dimension_numbers = #tpu.dot_dimension_numbers<[1], [1], [0], [0], [0, 0, 1, 0], [], []>} : vector<2x128xf32>, vector<15x128xf32>, vector<2x15xf32> -> vector<2x15xf32>
    %162 = arith.addf %146, %161 : vector<2x15xf32>
    %cst_43 = arith.constant dense<0.000000e+00> : vector<2xf32>
    %163 = vector.multi_reduction <add>, %152, %cst_43 [1] : vector<2x128xf32> to vector<2xf32>
    %164 = vector.shape_cast %163 : vector<2xf32> to vector<2x1xf32>
    %165 = arith.addf %147, %164 : vector<2x1xf32>
    %166 = vector.extract_strided_slice %5 {offsets = [1, 0], sizes = [1, 128], strides = [1, 1]} : vector<8x128xi32> to vector<1x128xi32>
    %167 = vector.broadcast %166 : vector<1x128xi32> to vector<2x128xi32>
    %168 = arith.cmpi eq, %167, %144 : vector<2x128xi32>
    %169 = arith.extui %168 : vector<2x128xi1> to vector<2x128xi32>
    %170 = arith.sitofp %169 : vector<2x128xi32> to vector<2x128xf32>
    %171 = vector.extract_strided_slice %135 {offsets = [1, 0], sizes = [1, 128], strides = [1, 1]} : vector<8x128xi32> to vector<1x128xi32>
    %172 = vector.broadcast %171 : vector<1x128xi32> to vector<15x128xi32>
    %173 = arith.cmpi eq, %145, %172 : vector<15x128xi32>
    %174 = vector.extract_strided_slice %141 {offsets = [1, 0], sizes = [1, 128], strides = [1, 1]} : vector<8x128xf32> to vector<1x128xf32>
    %cst_44 = arith.constant 0.000000e+00 : f32
    %175 = vector.shape_cast %174 : vector<1x128xf32> to vector<1x128xf32>
    %176 = vector.broadcast %175 : vector<1x128xf32> to vector<15x128xf32>
    %177 = vector.broadcast %cst_44 : f32 to vector<15x128xf32>
    %178 = arith.select %173, %176, %177 : vector<15x128xi1>, vector<15x128xf32>
    %cst_45 = arith.constant dense<0.000000e+00> : vector<2x15xf32>
    %179 = tpu.matmul %170, %178, %cst_45 {dimension_numbers = #tpu.dot_dimension_numbers<[1], [1], [0], [0], [0, 0, 1, 0], [], []>} : vector<2x128xf32>, vector<15x128xf32>, vector<2x15xf32> -> vector<2x15xf32>
    %180 = arith.addf %162, %179 : vector<2x15xf32>
    %cst_46 = arith.constant dense<0.000000e+00> : vector<2xf32>
    %181 = vector.multi_reduction <add>, %170, %cst_46 [1] : vector<2x128xf32> to vector<2xf32>
    %182 = vector.shape_cast %181 : vector<2xf32> to vector<2x1xf32>
    %183 = arith.addf %165, %182 : vector<2x1xf32>
    %184 = vector.extract_strided_slice %5 {offsets = [2, 0], sizes = [1, 128], strides = [1, 1]} : vector<8x128xi32> to vector<1x128xi32>
    %185 = vector.broadcast %184 : vector<1x128xi32> to vector<2x128xi32>
    %186 = arith.cmpi eq, %185, %144 : vector<2x128xi32>
    %187 = arith.extui %186 : vector<2x128xi1> to vector<2x128xi32>
    %188 = arith.sitofp %187 : vector<2x128xi32> to vector<2x128xf32>
    %189 = vector.extract_strided_slice %135 {offsets = [2, 0], sizes = [1, 128], strides = [1, 1]} : vector<8x128xi32> to vector<1x128xi32>
    %190 = vector.broadcast %189 : vector<1x128xi32> to vector<15x128xi32>
    %191 = arith.cmpi eq, %145, %190 : vector<15x128xi32>
    %192 = vector.extract_strided_slice %141 {offsets = [2, 0], sizes = [1, 128], strides = [1, 1]} : vector<8x128xf32> to vector<1x128xf32>
    %cst_47 = arith.constant 0.000000e+00 : f32
    %193 = vector.shape_cast %192 : vector<1x128xf32> to vector<1x128xf32>
    %194 = vector.broadcast %193 : vector<1x128xf32> to vector<15x128xf32>
    %195 = vector.broadcast %cst_47 : f32 to vector<15x128xf32>
    %196 = arith.select %191, %194, %195 : vector<15x128xi1>, vector<15x128xf32>
    %cst_48 = arith.constant dense<0.000000e+00> : vector<2x15xf32>
    %197 = tpu.matmul %188, %196, %cst_48 {dimension_numbers = #tpu.dot_dimension_numbers<[1], [1], [0], [0], [0, 0, 1, 0], [], []>} : vector<2x128xf32>, vector<15x128xf32>, vector<2x15xf32> -> vector<2x15xf32>
    %198 = arith.addf %180, %197 : vector<2x15xf32>
    %cst_49 = arith.constant dense<0.000000e+00> : vector<2xf32>
    %199 = vector.multi_reduction <add>, %188, %cst_49 [1] : vector<2x128xf32> to vector<2xf32>
    %200 = vector.shape_cast %199 : vector<2xf32> to vector<2x1xf32>
    %201 = arith.addf %183, %200 : vector<2x1xf32>
    %202 = vector.extract_strided_slice %5 {offsets = [3, 0], sizes = [1, 128], strides = [1, 1]} : vector<8x128xi32> to vector<1x128xi32>
    %203 = vector.broadcast %202 : vector<1x128xi32> to vector<2x128xi32>
    %204 = arith.cmpi eq, %203, %144 : vector<2x128xi32>
    %205 = arith.extui %204 : vector<2x128xi1> to vector<2x128xi32>
    %206 = arith.sitofp %205 : vector<2x128xi32> to vector<2x128xf32>
    %207 = vector.extract_strided_slice %135 {offsets = [3, 0], sizes = [1, 128], strides = [1, 1]} : vector<8x128xi32> to vector<1x128xi32>
    %208 = vector.broadcast %207 : vector<1x128xi32> to vector<15x128xi32>
    %209 = arith.cmpi eq, %145, %208 : vector<15x128xi32>
    %210 = vector.extract_strided_slice %141 {offsets = [3, 0], sizes = [1, 128], strides = [1, 1]} : vector<8x128xf32> to vector<1x128xf32>
    %cst_50 = arith.constant 0.000000e+00 : f32
    %211 = vector.shape_cast %210 : vector<1x128xf32> to vector<1x128xf32>
    %212 = vector.broadcast %211 : vector<1x128xf32> to vector<15x128xf32>
    %213 = vector.broadcast %cst_50 : f32 to vector<15x128xf32>
    %214 = arith.select %209, %212, %213 : vector<15x128xi1>, vector<15x128xf32>
    %cst_51 = arith.constant dense<0.000000e+00> : vector<2x15xf32>
    %215 = tpu.matmul %206, %214, %cst_51 {dimension_numbers = #tpu.dot_dimension_numbers<[1], [1], [0], [0], [0, 0, 1, 0], [], []>} : vector<2x128xf32>, vector<15x128xf32>, vector<2x15xf32> -> vector<2x15xf32>
    %216 = arith.addf %198, %215 : vector<2x15xf32>
    %cst_52 = arith.constant dense<0.000000e+00> : vector<2xf32>
    %217 = vector.multi_reduction <add>, %206, %cst_52 [1] : vector<2x128xf32> to vector<2xf32>
    %218 = vector.shape_cast %217 : vector<2xf32> to vector<2x1xf32>
    %219 = arith.addf %201, %218 : vector<2x1xf32>
    %220 = vector.extract_strided_slice %5 {offsets = [4, 0], sizes = [1, 128], strides = [1, 1]} : vector<8x128xi32> to vector<1x128xi32>
    %221 = vector.broadcast %220 : vector<1x128xi32> to vector<2x128xi32>
    %222 = arith.cmpi eq, %221, %144 : vector<2x128xi32>
    %223 = arith.extui %222 : vector<2x128xi1> to vector<2x128xi32>
    %224 = arith.sitofp %223 : vector<2x128xi32> to vector<2x128xf32>
    %225 = vector.extract_strided_slice %135 {offsets = [4, 0], sizes = [1, 128], strides = [1, 1]} : vector<8x128xi32> to vector<1x128xi32>
    %226 = vector.broadcast %225 : vector<1x128xi32> to vector<15x128xi32>
    %227 = arith.cmpi eq, %145, %226 : vector<15x128xi32>
    %228 = vector.extract_strided_slice %141 {offsets = [4, 0], sizes = [1, 128], strides = [1, 1]} : vector<8x128xf32> to vector<1x128xf32>
    %cst_53 = arith.constant 0.000000e+00 : f32
    %229 = vector.shape_cast %228 : vector<1x128xf32> to vector<1x128xf32>
    %230 = vector.broadcast %229 : vector<1x128xf32> to vector<15x128xf32>
    %231 = vector.broadcast %cst_53 : f32 to vector<15x128xf32>
    %232 = arith.select %227, %230, %231 : vector<15x128xi1>, vector<15x128xf32>
    %cst_54 = arith.constant dense<0.000000e+00> : vector<2x15xf32>
    %233 = tpu.matmul %224, %232, %cst_54 {dimension_numbers = #tpu.dot_dimension_numbers<[1], [1], [0], [0], [0, 0, 1, 0], [], []>} : vector<2x128xf32>, vector<15x128xf32>, vector<2x15xf32> -> vector<2x15xf32>
    %234 = arith.addf %216, %233 : vector<2x15xf32>
    %cst_55 = arith.constant dense<0.000000e+00> : vector<2xf32>
    %235 = vector.multi_reduction <add>, %224, %cst_55 [1] : vector<2x128xf32> to vector<2xf32>
    %236 = vector.shape_cast %235 : vector<2xf32> to vector<2x1xf32>
    %237 = arith.addf %219, %236 : vector<2x1xf32>
    %238 = vector.extract_strided_slice %5 {offsets = [5, 0], sizes = [1, 128], strides = [1, 1]} : vector<8x128xi32> to vector<1x128xi32>
    %239 = vector.broadcast %238 : vector<1x128xi32> to vector<2x128xi32>
    %240 = arith.cmpi eq, %239, %144 : vector<2x128xi32>
    %241 = arith.extui %240 : vector<2x128xi1> to vector<2x128xi32>
    %242 = arith.sitofp %241 : vector<2x128xi32> to vector<2x128xf32>
    %243 = vector.extract_strided_slice %135 {offsets = [5, 0], sizes = [1, 128], strides = [1, 1]} : vector<8x128xi32> to vector<1x128xi32>
    %244 = vector.broadcast %243 : vector<1x128xi32> to vector<15x128xi32>
    %245 = arith.cmpi eq, %145, %244 : vector<15x128xi32>
    %246 = vector.extract_strided_slice %141 {offsets = [5, 0], sizes = [1, 128], strides = [1, 1]} : vector<8x128xf32> to vector<1x128xf32>
    %cst_56 = arith.constant 0.000000e+00 : f32
    %247 = vector.shape_cast %246 : vector<1x128xf32> to vector<1x128xf32>
    %248 = vector.broadcast %247 : vector<1x128xf32> to vector<15x128xf32>
    %249 = vector.broadcast %cst_56 : f32 to vector<15x128xf32>
    %250 = arith.select %245, %248, %249 : vector<15x128xi1>, vector<15x128xf32>
    %cst_57 = arith.constant dense<0.000000e+00> : vector<2x15xf32>
    %251 = tpu.matmul %242, %250, %cst_57 {dimension_numbers = #tpu.dot_dimension_numbers<[1], [1], [0], [0], [0, 0, 1, 0], [], []>} : vector<2x128xf32>, vector<15x128xf32>, vector<2x15xf32> -> vector<2x15xf32>
    %252 = arith.addf %234, %251 : vector<2x15xf32>
    %cst_58 = arith.constant dense<0.000000e+00> : vector<2xf32>
    %253 = vector.multi_reduction <add>, %242, %cst_58 [1] : vector<2x128xf32> to vector<2xf32>
    %254 = vector.shape_cast %253 : vector<2xf32> to vector<2x1xf32>
    %255 = arith.addf %237, %254 : vector<2x1xf32>
    %256 = vector.extract_strided_slice %5 {offsets = [6, 0], sizes = [1, 128], strides = [1, 1]} : vector<8x128xi32> to vector<1x128xi32>
    %257 = vector.broadcast %256 : vector<1x128xi32> to vector<2x128xi32>
    %258 = arith.cmpi eq, %257, %144 : vector<2x128xi32>
    %259 = arith.extui %258 : vector<2x128xi1> to vector<2x128xi32>
    %260 = arith.sitofp %259 : vector<2x128xi32> to vector<2x128xf32>
    %261 = vector.extract_strided_slice %135 {offsets = [6, 0], sizes = [1, 128], strides = [1, 1]} : vector<8x128xi32> to vector<1x128xi32>
    %262 = vector.broadcast %261 : vector<1x128xi32> to vector<15x128xi32>
    %263 = arith.cmpi eq, %145, %262 : vector<15x128xi32>
    %264 = vector.extract_strided_slice %141 {offsets = [6, 0], sizes = [1, 128], strides = [1, 1]} : vector<8x128xf32> to vector<1x128xf32>
    %cst_59 = arith.constant 0.000000e+00 : f32
    %265 = vector.shape_cast %264 : vector<1x128xf32> to vector<1x128xf32>
    %266 = vector.broadcast %265 : vector<1x128xf32> to vector<15x128xf32>
    %267 = vector.broadcast %cst_59 : f32 to vector<15x128xf32>
    %268 = arith.select %263, %266, %267 : vector<15x128xi1>, vector<15x128xf32>
    %cst_60 = arith.constant dense<0.000000e+00> : vector<2x15xf32>
    %269 = tpu.matmul %260, %268, %cst_60 {dimension_numbers = #tpu.dot_dimension_numbers<[1], [1], [0], [0], [0, 0, 1, 0], [], []>} : vector<2x128xf32>, vector<15x128xf32>, vector<2x15xf32> -> vector<2x15xf32>
    %270 = arith.addf %252, %269 : vector<2x15xf32>
    %cst_61 = arith.constant dense<0.000000e+00> : vector<2xf32>
    %271 = vector.multi_reduction <add>, %260, %cst_61 [1] : vector<2x128xf32> to vector<2xf32>
    %272 = vector.shape_cast %271 : vector<2xf32> to vector<2x1xf32>
    %273 = arith.addf %255, %272 : vector<2x1xf32>
    %274 = vector.extract_strided_slice %5 {offsets = [7, 0], sizes = [1, 128], strides = [1, 1]} : vector<8x128xi32> to vector<1x128xi32>
    %275 = vector.broadcast %274 : vector<1x128xi32> to vector<2x128xi32>
    %276 = arith.cmpi eq, %275, %144 : vector<2x128xi32>
    %277 = arith.extui %276 : vector<2x128xi1> to vector<2x128xi32>
    %278 = arith.sitofp %277 : vector<2x128xi32> to vector<2x128xf32>
    %279 = vector.extract_strided_slice %135 {offsets = [7, 0], sizes = [1, 128], strides = [1, 1]} : vector<8x128xi32> to vector<1x128xi32>
    %280 = vector.broadcast %279 : vector<1x128xi32> to vector<15x128xi32>
    %281 = arith.cmpi eq, %145, %280 : vector<15x128xi32>
    %282 = vector.extract_strided_slice %141 {offsets = [7, 0], sizes = [1, 128], strides = [1, 1]} : vector<8x128xf32> to vector<1x128xf32>
    %cst_62 = arith.constant 0.000000e+00 : f32
    %283 = vector.shape_cast %282 : vector<1x128xf32> to vector<1x128xf32>
    %284 = vector.broadcast %283 : vector<1x128xf32> to vector<15x128xf32>
    %285 = vector.broadcast %cst_62 : f32 to vector<15x128xf32>
    %286 = arith.select %281, %284, %285 : vector<15x128xi1>, vector<15x128xf32>
    %cst_63 = arith.constant dense<0.000000e+00> : vector<2x15xf32>
    %287 = tpu.matmul %278, %286, %cst_63 {dimension_numbers = #tpu.dot_dimension_numbers<[1], [1], [0], [0], [0, 0, 1, 0], [], []>} : vector<2x128xf32>, vector<15x128xf32>, vector<2x15xf32> -> vector<2x15xf32>
    %288 = arith.addf %270, %287 : vector<2x15xf32>
    %cst_64 = arith.constant dense<0.000000e+00> : vector<2xf32>
    %289 = vector.multi_reduction <add>, %278, %cst_64 [1] : vector<2x128xf32> to vector<2xf32>
    %290 = vector.shape_cast %289 : vector<2xf32> to vector<2x1xf32>
    %291 = arith.addf %273, %290 : vector<2x1xf32>
    %cst_65 = arith.constant 1.500000e+01 : f32
    %292 = vector.broadcast %cst_65 : f32 to vector<2x1xf32>
    %293 = arith.divf %291, %292 : vector<2x1xf32>
    %294 = math.floor %293 : vector<2x1xf32>
    %cst_66 = arith.constant 1.000000e+00 : f32
    %295 = vector.broadcast %cst_66 : f32 to vector<2x1xf32>
    %296 = arith.maximumf %294, %295 : vector<2x1xf32>
    %297 = math.absf %288 : vector<2x15xf32>
    %cst_67 = arith.constant dense<0.000000e+00> : vector<2xf32>
    %298 = vector.multi_reduction <add>, %297, %cst_67 [1] : vector<2x15xf32> to vector<2xf32>
    %299 = vector.shape_cast %298 : vector<2xf32> to vector<2x1xf32>
    %300 = arith.divf %299, %296 : vector<2x1xf32>
    %301 = vector.shape_cast %300 : vector<2x1xf32> to vector<1x2x1xf32>
    %cst_68 = arith.constant dense<0.000000e+00> : vector<1xf32>
    %302 = vector.multi_reduction <add>, %301, %cst_68 [1, 2] : vector<1x2x1xf32> to vector<1xf32>
    %303 = vector.shape_cast %302 : vector<1xf32> to vector<1x1x1xf32>
    %304 = vector.extract %303[0, 0, 0] : f32 from vector<1x1x1xf32>
    %305 = tpu.iota {dimensions = array<i32: 0>} : vector<2x1xi32>
    %306 = vector.broadcast %0 : i32 to vector<2x1xi32>
    %307 = arith.addi %305, %306 : vector<2x1xi32>
    %c4_i32_69 = arith.constant 4 : i32
    %308 = vector.broadcast %c4_i32_69 : i32 to vector<2x1xi32>
    %309 = arith.cmpi slt, %307, %308 : vector<2x1xi32>
    %cst_70 = arith.constant 0x7F800000 : f32
    %310 = vector.broadcast %cst_70 : f32 to vector<2x1xf32>
    %311 = arith.select %309, %291, %310 : vector<2x1xi1>, vector<2x1xf32>
    %312 = vector.shape_cast %311 : vector<2x1xf32> to vector<1x2x1xf32>
    %cst_71 = arith.constant dense<0x7F800000> : vector<1xf32>
    %313 = vector.multi_reduction <minimumf>, %312, %cst_71 [1, 2] : vector<1x2x1xf32> to vector<1xf32>
    %314 = vector.shape_cast %313 : vector<1xf32> to vector<1x1x1xf32>
    %315 = vector.extract %314[0, 0, 0] : f32 from vector<1x1x1xf32>
    %316 = vector.broadcast %304 : f32 to vector<8x128xf32>
    %c0_72 = arith.constant 0 : index
    %c0_73 = arith.constant 0 : index
    %317 = vector.load %arg3[%c0_72, %c0_73] : memref<8x128xf32, #tpu.memory_space<vmem>>, vector<8x128xf32>
    tpu.vector_store %arg3[%c0_72, %c0_73], %316 {strides = array<i32>} : memref<8x128xf32, #tpu.memory_space<vmem>>, vector<8x128xf32>,
    %318 = vector.broadcast %315 : f32 to vector<8x128xf32>
    %c0_74 = arith.constant 0 : index
    %c0_75 = arith.constant 0 : index
    %319 = vector.load %arg4[%c0_74, %c0_75] : memref<8x128xf32, #tpu.memory_space<vmem>>, vector<8x128xf32>
    tpu.vector_store %arg4[%c0_74, %c0_75], %318 {strides = array<i32>} : memref<8x128xf32, #tpu.memory_space<vmem>>, vector<8x128xf32>,
    return
  }
  func.func @transform_0(%arg0: i32) -> (i32, i32, i32) {
    %c0_i32 = arith.constant 0 : i32
    %c0_i32_0 = arith.constant 0 : i32
    %c0_i32_1 = arith.constant 0 : i32
    %c0_i32_2 = arith.constant 0 : i32
    return %c0_i32, %c0_i32_0, %c0_i32_1 : i32, i32, i32
  }
  func.func @transform_1(%arg0: i32) -> (i32, i32) {
    %c0_i32 = arith.constant 0 : i32
    %c0_i32_0 = arith.constant 0 : i32
    %c0_i32_1 = arith.constant 0 : i32
    return %c0_i32, %c0_i32_0 : i32, i32
  }
  func.func @transform_2(%arg0: i32) -> (i32, i32) {
    %c0_i32 = arith.constant 0 : i32
    %c0_i32_0 = arith.constant 0 : i32
    return %arg0, %c0_i32 : i32, i32
  }
  func.func @transform_3(%arg0: i32) -> (i32, i32) {
    %c0_i32 = arith.constant 0 : i32
    %c0_i32_0 = arith.constant 0 : i32
    return %arg0, %c0_i32 : i32, i32
  }
}

</mosaic_0001>

<bundles_post_ra>
// kernel: tpu_custom_call.1
= control target key start
LH: loop header
LB: loop body
LE: loop exit
PB: predicated region body
PF: predicated region fallthrough
CT: control target
= control target key end

     0   :  { %9 = vsyncpa [#allocation3], 0  ;;  %s1557_s0 = inlined_call_operand.hbm [shape: f32[2,8,128], index: 0, kind: input, shape index: {}]   ;;  %s1558_s1 = inlined_call_operand.hbm [shape: s32[8,128], index: 1, kind: input, shape index: {}]   ;;  %s1559_s2 = inlined_call_operand.hbm [shape: f32[16,128], index: 2, kind: output, shape index: {0}]   ;;  %s1560_s3 = inlined_call_operand.hbm [shape: f32[16,128], index: 3, kind: output, shape index: {1}]  }
   0x1   :  { %10 = vsyncpa [#allocation6], 0 }
   0x2   :  { %11 = vsyncpa [#allocation4], 0 }
   0x3   :  { %13 = vsyncpa [#allocation4 + $0x1], 0 }
   0x4   :  { %14 = vsyncpa [#allocation9], 0 }
   0x5   :  { %16 = vsyncpa [#allocation9 + $0x1], 0  ;;  %s1191_s12 = smov 0   ;;  %s1193_s13 = smov 0  }
   0x6   :  { %s1195_s14 = smov 0   ;;  %s1197_s15 = smov 0  }
   0x7 LB: > { %s1212_s16 = sadd.s32 4294967295, %s1155_s15   ;;  %s846_s17 = sadd.s32 4294967294, %s1155_s15   ;;  %s1155_s15 = sphi %s1197_s15, %s1589_s15   ;;  %s1151_s14 = sphi %s1195_s14, %s1588_s14   ;;  %s1147_s13 = sphi %s1193_s13, %s1587_s13   ;;  %s1143_s12 = sphi %s1191_s12, %s1586_s12  }
   0x8   : > { %s1216_s18 = sadd.s32 1, %s1155_s15   ;;  %s71_s19 = sadd.s32 1, %s1151_s14 }
   0x9   : > { %s68_s20 = ssub.s32 %s1155_s15, %s1216_s18  ;;  %p81_p0 = scmp.ne.s32.totalorder %s1151_s14, %s1147_s13 }
   0xa   : > { %p69_p1 = scmp.eq.s32.totalorder %s68_s20, 0  ;;  %p82_p2 = scmp.eq.s32.totalorder %s1212_s16, 1 }
   0xb   : > { %p87_p3 = scmp.ne.s32.totalorder %s1147_s13, %s1143_s12  ;;  %p88_p4 = scmp.eq.s32.totalorder %s846_s17, 1 }
   0xc   : > { %s1227_s21 = scalar_select %p69_p1, %s1151_s14, %s71_s19  }
   0xd   : > { %p1229_p5 = por %p82_p2, %p81_p0  ;;  %p1233_p6 = por %p88_p4, %p87_p3 }
   0xe   : > { %p847_p7 = scmp.ge.s32.totalorder %s1155_s15, 1  ;;  %p121_p8 = scmp.lt.s32.totalorder %s1155_s15, 3 }
   0xf   : > { %p931_p9 = scmp.eq.s32.totalorder %s1212_s16, 0  ;;  %s132_s27 = sshll.u32 %s1557_s0, 4  ;;  %s133_s27 = int_to_ptr.hbm [resolvable:$true] %s132_s27 }
  0x10   : > { %p1240_p10 = pnand %p847_p7, %p121_p8  ;;  %s1157_s28 = smov [#allocation2]  }
  0x11   : > { %s134_s29 = sshll.u32 %s1157_s28, 4  ;;  %s147_s5 = sshll.u32 %s1558_s1, 4  ;;  %s135_s29 = int_to_ptr.vmem [resolvable:$true] %s134_s29  ;;  %s148_s5 = int_to_ptr.hbm [resolvable:$true] %s147_s5 }
  0x12   : > { %p917_p11 = pneg %p1240_p10  ;;  %s1158_s6 = smov 128  }
  0x13   : > { %s1159_s7 = smov 8   ;;  %s1160_s8 = smov [#allocation5]  }
  0x14   : > { %p918_p12 = pnand %p931_p9, %p917_p11  ;;  %s149_s9 = sshll.u32 %s1160_s8, 4  ;;  %s150_s9 = int_to_ptr.vmem [resolvable:$true] %s149_s9 }
  0x15   : > { %162 = sbr.rel (%p1240_p10) target bundleno = 1340 (0x53c), region = 28 }
  0x16   : > { %920 = dma.hbm_to_vmem [thread:$0]  (!%p918_p12), %s133_s27, 256, %s135_s29, [#allocation3], %s1158_s6, %s1158_s6, %s1159_s7  }
  0x17   : > { %923 = dma.hbm_to_vmem [thread:$0]  (!%p918_p12), %s148_s5, 128, %s150_s9, [#allocation6]  }
  0x1a   : > { %1126 = dma.done.wait (%p931_p9), [#allocation3], 256  }
  0x1b   : > { %1128 = vsyncadd (%p931_p9), [#allocation3], 4294967040 }
  0x1c   : > { %1130 = dma.done.wait (%p931_p9), [#allocation6], 128  }
  0x1d   : > { %1132 = vsyncadd (%p931_p9), [#allocation6], 4294967168  ;;  %s855_s10 = sshll.u32 %s1212_s16, 1  ;;  %v1268_v2 = vld [vmem:[#allocation5] sm:$0xff]  ;;  %v1161_v3 = vmov 0.0   ;;  %s1162_s11 = smov 1   ;;  %v205_v7 = vlaneseq }
  0x1e   : > { %v1265_v0 = vstv %s855_s10  ;;  %s1163_s17 = smov 2   ;;  %s1164_s19 = smov 4   ;;  %v1169_v46 = vmov 15.0  }
  0x1f   : > { %v198_v1 = vadd.s32 1, %v1265_v0  ;;  %vm199_vm0 = vcmp.eq.s32.totalorder %v1268_v2, %v1265_v0  ;;  %v1282_v8 = vand.u32 127, %v205_v7  ;;  %s1165_s20 = smov 8   ;;  %s1166_s24 = smov 16   ;;  %987 = vrcp.f32 %v1169_v46 }
  0x20   : > { %v1274_v4 = vsel %vm199_vm0, 1.0, %v1161_v3  ;;  %s1167_s25 = smov 32   ;;  %s1168_s26 = smov 64  }
  0x21   : > { %vm200_vm1 = vcmp.eq.s32.totalorder %v1268_v2, %v198_v1  ;;  %vm211_vm2 = vcmp.ge.s32.totalorder %v1282_v8, 1  ;;  %vm220_vm3 = vcmp.ge.s32.totalorder %v1282_v8, 2  ;;  %vm229_vm4 = vcmp.ge.s32.totalorder %v1282_v8, 4  ;;  %s1501_s27 = sand.u32 1, %s1147_s13   ;;  %s892_s29 = sshll.u32 %s1212_s16, 3 }
  0x22   : > { %v1277_v5 = vsel %vm200_vm1, 1.0, %v1161_v3  ;;  %vm238_vm5 = vcmp.ge.s32.totalorder %v1282_v8, 8  ;;  %vm247_vm6 = vcmp.ge.s32.totalorder %v1282_v8, 16  ;;  %vm256_vm7 = vcmp.ge.s32.totalorder %v1282_v8, 32  ;;  %s853_s28 = sshll.u32 %s1501_s27, 3  ;;  %s725_s5 = scalar_lea.hbm %s1559_s2, %s892_s29 }
  0x23   : > { %v982_v6 = vpack.i.bf16 %v1277_v5, %v1274_v4  ;;  %vm265_vm15 = vcmp.ge.s32.totalorder %v1282_v8, 64  ;;  %s191_s6 = scalar_lea.vmem [#allocation8], %s853_s28  ;;  %s739_s10 = scalar_lea.hbm %s1560_s3, %s892_s29 }
  0x24   : > { %s741_s7 = sshll.u32 %s191_s6, 4  ;;  %s1073_s4 = scalar_lea.hbm %s1559_s2, 16  ;;  %s1511_s7 = int_to_ptr.vmem [resolvable:$true] %s741_s7 }
  0x25   : > { %983 = vrot.lane.b32.xlu0 %v982_v6, %s1162_s11  ;;  %v988_v51 = vpop.eup %987  ;;  %s184_s11 = scalar_lea.vmem [#allocation7], %s853_s28 }
  0x26   : > { %v342_v54 = vmul.f32 15.0, %v988_v51  ;;  %vm346_vm8 = vweird.f32 %v988_v51 }
  0x28   : > { %v343_v57 = vsub.f32 1.0, %v342_v54 }
  0x2a   : > { %v344_v60 = vmul.f32 %v988_v51, %v343_v57 }
  0x2c   : > { %v345_v63 = vadd.f32 %v988_v51, %v344_v60 }
  0x97   : > { %v984_v9 = vpop.permute.xlu0 %983 }
  0x98   : > { %v986_v10 = vunpack.i.h.bf16 %v984_v9  ;;  %v985_v11 = vunpack.i.l.bf16 %v984_v9  ;;  %v1308_v9 = vsel %vm346_vm8, %v988_v51, %v345_v63  ;;  %vm1561_vm8 = vcmask 1041408  }
  0x9a   : > { %v213_v12 = vsel %vm211_vm2, %v986_v10, 0.0  ;;  %v212_v13 = vsel %vm211_vm2, %v985_v11, 0.0 }
  0x9b   : > { %v215_v14 = vadd.f32 %v1277_v5, %v213_v12  ;;  %v214_v15 = vadd.f32 %v1274_v4, %v212_v13 }
  0x9d   : > { %218 = vrot.lane.b32.xlu1 %v215_v14, %s1163_s17  ;;  %216 = vrot.lane.b32.xlu0 %v214_v15, %s1163_s17  ;;  %s727_s17 = sshll.u32 %s184_s11, 4  ;;  %s728_s17 = int_to_ptr.vmem [resolvable:$true] %s727_s17 }
 0x10f   : > { %v219_v16 = vpop.permute.xlu1 %218  ;;  %v217_v17 = vpop.permute.xlu0 %216 }
 0x110   : > { %v222_v18 = vsel %vm220_vm3, %v219_v16, 0.0  ;;  %v221_v19 = vsel %vm220_vm3, %v217_v17, 0.0  ;;  %v1315_v16 = vshrl.u32 %v205_v7, 7 }
 0x111   : > { %v223_v20 = vadd.f32 %v221_v19, %v214_v15  ;;  %v224_v21 = vadd.f32 %v222_v18, %v215_v14 }
 0x112   : > { %vm278_vm9 = vcmp.gt.s32.totalorder %v1315_v16, 0  ;;  %vm285_vm10 = vcmp.gt.s32.totalorder %v1315_v16, 1  ;;  %vm292_vm12 = vcmp.gt.s32.totalorder %v1315_v16, 2  ;;  %vm299_vm13 = vcmp.gt.s32.totalorder %v1315_v16, 3 }
 0x113   : > { %227 = vrot.lane.b32.xlu2 %v224_v21, %s1164_s19  ;;  %225 = vrot.lane.b32.xlu1 %v223_v20, %s1164_s19  ;;  %vm306_vm14 = vcmp.gt.s32.totalorder %v1315_v16, 4  ;;  %vm313_vm0 = vcmp.gt.s32.totalorder %v1315_v16, 5  ;;  %vm320_vm1 = vcmp.gt.s32.totalorder %v1315_v16, 6  ;;  %s729_s19 = sshll.u32 %s725_s5, 4  ;;  %s730_s19 = int_to_ptr.hbm [resolvable:$true] %s729_s19 }
 0x16d   : > { %v228_v22 = vpop.permute.xlu2 %227 }
 0x16e   : > { %v231_v23 = vsel %vm229_vm4, %v228_v22, 0.0 }
 0x16f   : > { %v233_v24 = vadd.f32 %v231_v23, %v224_v21 }
 0x171   : > { %236 = vrot.lane.b32.xlu0 %v233_v24, %s1165_s20 }
 0x185   : > { %v226_v25 = vpop.permute.xlu1 %225 }
 0x186   : > { %v230_v26 = vsel %vm229_vm4, %v226_v25, 0.0 }
 0x187   : > { %v232_v27 = vadd.f32 %v230_v26, %v223_v20 }
 0x189   : > { %234 = vrot.lane.b32.xlu2 %v232_v27, %s1165_s20  ;;  %s743_s20 = sshll.u32 %s739_s10, 4  ;;  %s1513_s20 = int_to_ptr.hbm [resolvable:$true] %s743_s20 }
 0x1e3   : > { %v235_v28 = vpop.permute.xlu2 %234  ;;  %v237_v29 = vpop.permute.xlu0 %236 }
 0x1e4   : > { %v239_v30 = vsel %vm238_vm5, %v235_v28, 0.0  ;;  %v240_v31 = vsel %vm238_vm5, %v237_v29, 0.0 }
 0x1e5   : > { %v241_v32 = vadd.f32 %v239_v30, %v232_v27  ;;  %v242_v33 = vadd.f32 %v240_v31, %v233_v24 }
 0x1e7   : > { %243 = vrot.lane.b32.xlu1 %v241_v32, %s1166_s24  ;;  %245 = vrot.lane.b32.xlu2 %v242_v33, %s1166_s24 }
 0x210   : > { %272 = vadd.xlane.f32.xlu2 %v1274_v4 }
 0x241   : > { %v246_v34 = vpop.permute.xlu2 %245 }
 0x242   : > { %v249_v35 = vsel %vm247_vm6, %v246_v34, 0.0 }
 0x243   : > { %v251_v36 = vadd.f32 %v249_v35, %v242_v33 }
 0x245   : > { %254 = vrot.lane.b32.xlu1 %v251_v36, %s1167_s25 }
 0x259   : > { %v244_v37 = vpop.permute.xlu1 %243 }
 0x25a   : > { %v248_v38 = vsel %vm247_vm6, %v244_v37, 0.0 }
 0x25b   : > { %v250_v39 = vadd.f32 %v248_v38, %v241_v32 }
 0x25d   : > { %252 = vrot.lane.b32.xlu0 %v250_v39, %s1167_s25  ;;  %s710_s25 = scalar_lea.sflag [#allocation4], %s1501_s27 }
 0x283   : > { %v1300_v47 = vpop.xlane.xlu2 %272 }
 0x284   : > { %v329_v49 = vrot.slane %v1300_v47, 4  ;;  %v279_v18 = vperm.slane %v1300_v47, 0  ;;  %v286_v19 = vperm.slane %v1300_v47, 1  ;;  %v293_v7 = vperm.slane %v1300_v47, 2 }
 0x285   : > { %v300_v30 = vperm.slane %v1300_v47, 3 }
 0x286   : > { %v330_v52 = vadd.f32 %v329_v49, %v1300_v47  ;;  %v281_v22 = vsel %vm278_vm9, %v279_v18, 0.0  ;;  %v288_v23 = vsel %vm285_vm10, %v286_v19, 0.0  ;;  %v295_v29 = vsel %vm292_vm12, %v293_v7, 0.0 }
 0x287   : > { %274 = vadd.xlane.f32.xlu0 %v1277_v5  ;;  %v290_v28 = vadd.f32 %v288_v23, %v281_v22  ;;  %v302_v35 = vsel %vm299_vm13, %v300_v30, 0.0  ;;  %v382_v22 = vperm.slane %v1268_v2, 0  ;;  %v486_v7 = vperm.slane %v1268_v2, 3 }
 0x288   : > { %v331_v55 = vrot.slane %v330_v52, 2 }
 0x289   : > { %v297_v34 = vadd.f32 %v295_v29, %v290_v28  ;;  %v451_v28 = vperm.slane %v1268_v2, 2 }
 0x28a   : > { %v332_v58 = vadd.f32 %v331_v55, %v330_v52 }
 0x28c   : > { %v333_v61 = vrot.slane %v332_v58, 1 }
 0x28e   : > { %v334_v1 = vadd.f32 %v333_v61, %v332_v58 }
 0x290   : > { %v348_v10 = vmul.f32 %v1308_v9, %v334_v1 }
 0x292   : > { %v350_v12 = vfloor.f32 %v348_v10 }
 0x294   : > { %v355_v14 = vmul.f32 %v1274_v4, %v350_v12 }
 0x2b7   : > { %v255_v43 = vpop.permute.xlu1 %254 }
 0x2b8   : > { %v258_v44 = vsel %vm256_vm7, %v255_v43, 0.0 }
 0x2b9   : > { %v1297_v45 = vadd.f32 %v258_v44, %v251_v36  ;;  %v307_v36 = vperm.slane %v1300_v47, 4  ;;  %v314_v44 = vperm.slane %v1300_v47, 5 }
 0x2bb   : > { %v309_v43 = vsel %vm306_vm14, %v307_v36, 0.0  ;;  %v316_v55 = vsel %vm313_vm0, %v314_v44, 0.0  ;;  %v193_v44 = vld [vmem:[#allocation2] sm:$0xff] }
 0x2cf   : > { %v253_v40 = vpop.permute.xlu0 %252 }
 0x2d0   : > { %v257_v41 = vsel %vm256_vm7, %v253_v40, 0.0 }
 0x2d1   : > { %v1294_v42 = vadd.f32 %v257_v41, %v250_v39  ;;  %v304_v41 = vadd.f32 %v302_v35, %v297_v34 }
 0x2d3   : > { %261 = vrot.lane.b32.xlu1 %v1294_v42, %s1168_s26  ;;  %v311_v54 = vadd.f32 %v309_v43, %v304_v41 }
 0x2db   : > { %263 = vrot.lane.b32.xlu1 %v1297_v45, %s1168_s26  ;;  %s1067_s26 = sshra.s32 %s730_s19, 4  ;;  %s1068_s26 = int_to_ptr.hbm [resolvable:$true] %s1067_s26 }
 0x2dc   : > { %s1069_s28 = scalar_lea.hbm %s1068_s26, 8  ;;  %p1074_p2 = scmp.lt.s32.totalorder %s1068_s26, %s1559_s2 }
 0x2dd   : > { %p1070_p13 = scmp.ne.s32.totalorder %s1068_s26, %s1069_s28  ;;  %p1075_p3 = scmp.lt.s32.totalorder %s1073_s4, %s1069_s28 }
 0x2df   : > { %p1071_p0 = pnand %p1070_p13, %p1229_p5  ;;  %p1076_p4 = por %p1075_p3, %p1074_p2 }
 0x2e1   : > { %p1072_p1 = pneg %p1071_p0 }
 0x2e3   : > { %p1077_p7 = pnand %p1076_p4, %p1072_p1 }
 0x2fa   : > { %v1302_v48 = vpop.xlane.xlu0 %274 }
 0x2fb   : > { %v335_v50 = vrot.slane %v1302_v48, 4  ;;  %v280_v20 = vperm.slane %v1302_v48, 0  ;;  %v287_v21 = vperm.slane %v1302_v48, 1  ;;  %v294_v27 = vperm.slane %v1302_v48, 2 }
 0x2fc   : > { %v301_v33 = vperm.slane %v1302_v48, 3  ;;  %v308_v40 = vperm.slane %v1302_v48, 4  ;;  %v322_v61 = vperm.slane %v1302_v48, 6 }
 0x2fd   : > { %v336_v53 = vadd.f32 %v335_v50, %v1302_v48  ;;  %v282_v25 = vsel %vm278_vm9, %v280_v20, 0.0  ;;  %v289_v26 = vsel %vm285_vm10, %v287_v21, 0.0  ;;  %v296_v32 = vsel %vm292_vm12, %v294_v27, 0.0 }
 0x2fe   : > { %v291_v31 = vadd.f32 %v289_v26, %v282_v25  ;;  %v303_v39 = vsel %vm299_vm13, %v301_v33, 0.0  ;;  %v310_v52 = vsel %vm306_vm14, %v308_v40, 0.0  ;;  %v324_v12 = vsel %vm320_vm1, %v322_v61, 0.0 }
 0x2ff   : > { %v337_v56 = vrot.slane %v336_v53, 2  ;;  %v397_v21 = vperm.slane %v1268_v2, 1 }
 0x300   : > { %v298_v38 = vadd.f32 %v296_v32, %v291_v31  ;;  %v556_v31 = vperm.slane %v1268_v2, 5 }
 0x301   : > { %v338_v59 = vadd.f32 %v337_v56, %v336_v53  ;;  %v315_v53 = vperm.slane %v1302_v48, 5  ;;  %v321_v56 = vperm.slane %v1300_v47, 6 }
 0x302   : > { %v305_v50 = vadd.f32 %v303_v39, %v298_v38 }
 0x303   : > { %v339_v62 = vrot.slane %v338_v59, 1  ;;  %v317_v60 = vsel %vm313_vm0, %v315_v53, 0.0  ;;  %v323_v63 = vsel %vm320_vm1, %v321_v56, 0.0 }
 0x305   : > { %v340_v6 = vadd.f32 %v339_v62, %v338_v59  ;;  %v312_v59 = vadd.f32 %v310_v52, %v305_v50  ;;  %v318_v62 = vadd.f32 %v316_v55, %v311_v54  ;;  %v521_v52 = vperm.slane %v1268_v2, 4 }
 0x307   : > { %v349_v11 = vmul.f32 %v1308_v9, %v340_v6 }
 0x309   : > { %v351_v13 = vfloor.f32 %v349_v11  ;;  %v319_v11 = vadd.f32 %v317_v60, %v312_v59 }
 0x30b   : > { %v356_v15 = vmul.f32 %v1277_v5, %v351_v13  ;;  %v326_v20 = vadd.f32 %v324_v12, %v319_v11  ;;  %v626_v12 = vperm.slane %v1268_v2, 7 }
 0x30d   : > { %v1317_v17 = vadd.f32 %v356_v15, %v355_v14 }
 0x30f   : > { %vm358_vm11 = vcmp.gt.f32.partialorder %v1317_v17, 0.5 }
 0x310   : > { %v1330_v24 = vsel %vm358_vm11, %v1317_v17, 1.0  ;;  %v591_v17 = vperm.slane %v1268_v2, 6 }
 0x311   : > { %989 = vrcp.f32 %v1330_v24  ;;  %vm365_vm2 = vweird.f32 %v1330_v24  ;;  %v369_v14 = vand.u32 2147483647, %v1330_v24  ;;  %v371_v15 = vand.u32 2147483648, %v1330_v24 }
 0x313   : > { %vm370_vm5 = vcmp.eq.f32.partialorder %v369_v14, 8.507059e+37  ;;  %v372_v25 = vor.u32 1.1754944e-38, %v371_v15 }
 0x317   : > { %v1339_v37 = vpop.eup %989 }
 0x318   : > { %v361_v46 = vmul.f32 %v1339_v37, %v1330_v24  ;;  %vm366_vm3 = vweird.f32 %v1339_v37 }
 0x319   : > { %vm1366_vm4 = vmor %vm365_vm2, %vm366_vm3 }
 0x31a   : > { %v362_v57 = vsub.f32 1.0, %v361_v46  ;;  %v195_v46 = vld [vmem:[#allocation2 + $0x8] sm:$0xff] }
 0x31b   : > { %v378_v55 = vsub.f32 %v193_v44, %v195_v46 }
 0x31c   : > { %v363_v1 = vmul.f32 %v1339_v37, %v362_v57  ;;  %v381_v57 = vadd.s32 8, %v1315_v16 }
 0x31e   : > { %v364_v48 = vadd.f32 %v1339_v37, %v363_v1 }
 0x320   : > { %v368_v24 = vsel %vm1366_vm4, %v1339_v37, %v364_v48 }
 0x321   : > { %v373_v33 = vsel %vm370_vm5, %v372_v25, %v368_v24 }
 0x345   : > { %v262_v49 = vpop.permute.xlu1 %261 }
 0x346   : > { %v266_v51 = vsel %vm265_vm15, %v262_v49, 0.0 }
 0x347   : > { %v268_v58 = vadd.f32 %v266_v51, %v1294_v42  ;;  %v325_v42 = vadd.f32 %v323_v63, %v318_v62 }
 0x349   : > { %v270_v6 = vsub.f32 %v268_v58, %v1274_v4 }
 0x34b   : > { %v327_v18 = vadd.f32 %v325_v42, %v270_v6 }
 0x34d   : > { %v264_v10 = vpop.permute.xlu1 %263  ;;  %v352_v26 = vmul.f32 %v1274_v4, %v327_v18 }
 0x34e   : > { %v267_v47 = vsel %vm265_vm15, %v264_v10, 0.0 }
 0x34f   : > { %v269_v13 = vadd.f32 %v267_v47, %v1297_v45  ;;  %v1374_v45 = vadd.s32 %v1315_v16, %v1265_v0 }
 0x351   : > { %v271_v19 = vsub.f32 %v269_v13, %v1277_v5  ;;  %vm1384_vm6 = vcmp.eq.s32.totalorder %v397_v21, %v1374_v45  ;;  %vm1389_vm7 = vcmp.eq.s32.totalorder %v382_v22, %v1374_v45  ;;  %vm1397_vm9 = vcmp.eq.s32.totalorder %v486_v7, %v1374_v45 }
 0x352   : > { %v859_v30 = vsel %vm1384_vm6, 1.0, %v1161_v3  ;;  %v870_v34 = vsel %vm1397_vm9, 1.0, %v1161_v3  ;;  %v858_v35 = vsel %vm1389_vm7, 1.0, %v1161_v3  ;;  %vm1410_vm10 = vcmp.eq.s32.totalorder %v451_v28, %v1374_v45 }
 0x353   : > { %v328_v23 = vadd.f32 %v326_v20, %v271_v19  ;;  %v447_v32 = vsel %vm1561_vm8, %v859_v30, 0.0  ;;  %v517_v38 = vsel %vm1561_vm8, %v870_v34, 0.0  ;;  %v393_v39 = vsel %vm1561_vm8, %v858_v35, 0.0 }
 0x354   : > { %448 = vadd.xlane.f32.xlu2 %v447_v32  ;;  %v866_v40 = vsel %vm1410_vm10, 1.0, %v1161_v3  ;;  %518 = vadd.xlane.f32.xlu0 %v517_v38  ;;  %vm1420_vm13 = vcmp.eq.s32.totalorder %v556_v31, %v1374_v45  ;;  %vm1441_vm0 = vcmp.eq.s32.totalorder %v521_v52, %v1374_v45  ;;  %v1170_v7 = vmov 1.0  }
 0x355   : > { %v353_v27 = vmul.f32 %v1277_v5, %v328_v23  ;;  %394 = vadd.xlane.f32.xlu1 %v393_v39  ;;  %v878_v50 = vsel %vm1420_vm13, 1.0, %v1161_v3  ;;  %v482_v53 = vsel %vm1561_vm8, %v866_v40, 0.0  ;;  %v874_v1 = vsel %vm1441_vm0, 1.0, %v1161_v3 }
 0x356   : > { %v587_v56 = vsel %vm1561_vm8, %v878_v50, 0.0  ;;  %v552_v42 = vsel %vm1561_vm8, %v874_v1, 0.0 }
 0x357   : > { %v354_v4 = vadd.f32 %v353_v27, %v352_v26 }
 0x359   : > { %v374_v36 = vmul.f32 %v373_v33, %v354_v4 }
 0x35b   : > { %vm896_vm12 = vcmp.lt.s32.totalorder %v374_v36, 0  ;;  %v897_v41 = vceil.f32 %v374_v36  ;;  %v898_v43 = vfloor.f32 %v374_v36 }
 0x35c   : > { %483 = vadd.xlane.f32.xlu2 %v482_v53  ;;  %588 = vadd.xlane.f32.xlu0 %v587_v56 }
 0x35d   : > { %v899_v51 = vsel %vm896_vm12, %v897_v41, %v898_v43  ;;  %vm1458_vm12 = vcmp.eq.s32.totalorder %v591_v17, %v1374_v45 }
 0x35e   : > { %v1429_v54 = vcvt.f32.s32 %v899_v51  ;;  %v882_v22 = vsel %vm1458_vm12, 1.0, %v1161_v3 }
 0x360   : > { %vm376_vm14 = vcmp.lt.s32.totalorder %v1429_v54, 15  ;;  %v401_v58 = vperm.slane %v1429_v54, 1  ;;  %v386_v59 = vperm.slane %v1429_v54, 0  ;;  %v455_v60 = vperm.slane %v1429_v54, 2 }
 0x361   : > { %vm377_vm15 = vmand %vm358_vm11, %vm376_vm14  ;;  %v490_v61 = vperm.slane %v1429_v54, 3  ;;  %v525_v13 = vperm.slane %v1429_v54, 4  ;;  %v560_v48 = vperm.slane %v1429_v54, 5  ;;  %v595_v14 = vperm.slane %v1429_v54, 6 }
 0x362   : > { %v379_v63 = vsel %vm377_vm15, %v378_v55, 0.0  ;;  %vm403_vm11 = vcmp.eq.s32.totalorder %v381_v57, %v401_v58  ;;  %vm388_vm1 = vcmp.eq.s32.totalorder %v381_v57, %v386_v59  ;;  %vm457_vm2 = vcmp.eq.s32.totalorder %v381_v57, %v455_v60 }
 0x363   : > { %v404_v6 = vperm.slane %v379_v63, 1  ;;  %v389_v10 = vperm.slane %v379_v63, 0  ;;  %v458_v11 = vperm.slane %v379_v63, 2  ;;  %v493_v47 = vperm.slane %v379_v63, 3 }
 0x364   : > { %vm492_vm3 = vcmp.eq.s32.totalorder %v381_v57, %v490_v61  ;;  %v630_v15 = vperm.slane %v1429_v54, 7  ;;  %vm402_vm4 = vcmp.eq.s32.totalorder %v1315_v16, %v401_v58  ;;  %vm387_vm5 = vcmp.eq.s32.totalorder %v1315_v16, %v386_v59  ;;  %553 = vadd.xlane.f32.xlu2 %v552_v42 }
 0x365   : > { %860 = vmatpush.xpose.msk.msra.mxu0 %vm403_vm11, %v404_v6  ;;  %863 = vmatpush.xpose.msk.msra.mxu1 %vm388_vm1, %v389_v10  ;;  %vm1463_vm14 = vcmp.eq.s32.totalorder %v626_v12, %v1374_v45  ;;  %vm456_vm15 = vcmp.eq.s32.totalorder %v1315_v16, %v455_v60  ;;  %vm491_vm11 = vcmp.eq.s32.totalorder %v1315_v16, %v490_v61  ;;  %v528_v19 = vperm.slane %v379_v63, 4 }
 0x366   : > { %867 = vmatpush.xpose.msk.msra.mxu2 %vm457_vm2, %v458_v11  ;;  %871 = vmatpush.xpose.msk.msra.mxu3 %vm492_vm3, %v493_v47  ;;  %v563_v20 = vperm.slane %v379_v63, 5  ;;  %vm527_vm1 = vcmp.eq.s32.totalorder %v381_v57, %v525_v13  ;;  %vm562_vm2 = vcmp.eq.s32.totalorder %v381_v57, %v560_v48  ;;  %v598_v8 = vperm.slane %v379_v63, 6 }
 0x367   : > { %v633_v21 = vperm.slane %v379_v63, 7  ;;  %vm597_vm3 = vcmp.eq.s32.totalorder %v381_v57, %v595_v14  ;;  %vm632_vm8 = vcmp.eq.s32.totalorder %v381_v57, %v630_v15  ;;  %v886_v23 = vsel %vm1463_vm14, 1.0, %v1161_v3 }
 0x369   : > { %861 = vmatpush.xpose.msk.msra.mxu0 %vm402_vm4, %v404_v6  ;;  %864 = vmatpush.xpose.msk.msra.mxu1 %vm387_vm5, %v389_v10  ;;  %vm526_vm4 = vcmp.eq.s32.totalorder %v1315_v16, %v525_v13  ;;  %vm561_vm5 = vcmp.eq.s32.totalorder %v1315_v16, %v560_v48 }
 0x36a   : > { %868 = vmatpush.xpose.msk.msra.mxu2 %vm456_vm15, %v458_v11  ;;  %872 = vmatpush.xpose.msk.msra.mxu3 %vm491_vm11, %v493_v47  ;;  %vm1583_vm15 = vcmask 1041408   ;;  %vm695_vm11 = vcmp.lt.s32.totalorder %v1374_v45, 4 }
 0x36b   : > { %v622_v3 = vsel %vm1583_vm15, %v882_v22, 0.0 }
 0x36c   : > { %862 = vmatmul.msk.f32.vlgmr.msra.gmra.mxu0 %vm1384_vm6, %v1170_v7  ;;  %865 = vmatmul.msk.f32.vlgmr.msra.gmra.mxu1 %vm1389_vm7, %v1170_v7  ;;  %vm631_vm6 = vcmp.eq.s32.totalorder %v1315_v16, %v630_v15  ;;  %vm665_vm7 = vcmask 115712  }
 0x36d   : > { %875 = vmatpush.xpose.msk.msrb.mxu0 %vm527_vm1, %v528_v19  ;;  %879 = vmatpush.xpose.msk.msrb.mxu1 %vm562_vm2, %v563_v20 }
 0x36e   : > { %883 = vmatpush.xpose.msk.msrb.mxu2 %vm597_vm3, %v598_v8  ;;  %887 = vmatpush.xpose.msk.msrb.mxu3 %vm632_vm8, %v633_v21  ;;  %vm1584_vm8 = vmmov %vm1583_vm15 }
 0x36f   : > { %869 = vmatmul.msk.f32.vlgmr.msra.gmra.mxu2 %vm1410_vm10, %v1170_v7  ;;  %873 = vmatmul.msk.f32.vlgmr.msra.gmra.mxu3 %vm1397_vm9, %v1170_v7  ;;  %v657_v24 = vsel %vm1584_vm8, %v886_v23, 0.0  ;;  %vm596_vm10 = vcmp.eq.s32.totalorder %v1315_v16, %v595_v14  ;;  %vm1585_vm1 = vmmov %vm1584_vm8 }
 0x370   : > { %623 = vadd.xlane.f32.xlu2 %v622_v3  ;;  %658 = vadd.xlane.f32.xlu0 %v657_v24 }
 0x371   : > { %876 = vmatpush.xpose.msk.msrb.mxu0 %vm526_vm4, %v528_v19  ;;  %880 = vmatpush.xpose.msk.msrb.mxu1 %vm561_vm5, %v563_v20 }
 0x372   : > { %884 = vmatpush.xpose.msk.msrb.mxu2 %vm596_vm10, %v598_v8  ;;  %888 = vmatpush.xpose.msk.msrb.mxu3 %vm631_vm6, %v633_v21 }
 0x374   : > { %877 = vmatmul.msk.f32.vlgmr.msrb.gmra.mxu0 %vm1441_vm0, %v1170_v7  ;;  %881 = vmatmul.msk.f32.vlgmr.msrb.gmra.mxu1 %vm1420_vm13, %v1170_v7 }
 0x377   : > { %885 = vmatmul.msk.f32.vlgmr.msrb.gmra.mxu2 %vm1458_vm12, %v1170_v7  ;;  %889 = vmatmul.msk.f32.vlgmr.msrb.gmra.mxu3 %vm1463_vm14, %v1170_v7  ;;  %vm684_vm14 = vcmask 1024  }
 0x3c7   : > { %v449_v38 = vpop.xlane.xlu2 %448  ;;  %v519_v43 = vpop.xlane.xlu0 %518 }
 0x3c8   : > { %v395_v40 = vpop.xlane.xlu1 %394 }
 0x3c9   : > { %v450_v41 = vadd.f32 %v449_v38, %v395_v40 }
 0x3cf   : > { %v484_v39 = vpop.xlane.xlu2 %483  ;;  %v589_v50 = vpop.xlane.xlu0 %588 }
 0x3d0   : > { %v485_v44 = vadd.f32 %v484_v39, %v450_v41 }
 0x3d2   : > { %v520_v49 = vadd.f32 %v519_v43, %v485_v44 }
 0x3d7   : > { %v554_v46 = vpop.xlane.xlu2 %553 }
 0x3d8   : > { %v555_v51 = vadd.f32 %v554_v46, %v520_v49 }
 0x3da   : > { %v590_v52 = vadd.f32 %v589_v50, %v555_v51 }
 0x3e3   : > { %v624_v53 = vpop.xlane.xlu2 %623  ;;  %v659_v55 = vpop.xlane.xlu0 %658 }
 0x3e4   : > { %v625_v54 = vadd.f32 %v624_v53, %v590_v52 }
 0x3e6   : > { %v660_v56 = vadd.f32 %v659_v55, %v625_v54 }
 0x3e8   : > { %v661_v57 = vmul.f32 %v660_v56, %v1308_v9  ;;  %v696_v13 = vsel %vm695_vm11, %v660_v56, inf }
 0x3e9   : > { %v424_v25 = vpop.f32.mrf.mxu0  ;;  %v444_v26 = vpop.f32.mrf.mxu1  ;;  %v697_v48 = vsel %vm1585_vm1, %v696_v13, inf }
 0x3ea   : > { %v445_v27 = vadd.f32 %v444_v26, %v424_v25  ;;  %v662_v58 = vfloor.f32 %v661_v57  ;;  %v698_v14 = vrot.slane %v697_v48, 4 }
 0x3ec   : > { %v663_v59 = vmax.f32 %v662_v58, 1.0  ;;  %v699_v15 = vmin.f32 %v697_v48, %v698_v14 }
 0x3ee   : > { %991 = vrcp.f32 %v663_v59  ;;  %vm674_vm9 = vweird.f32 %v663_v59  ;;  %v680_v1 = vand.u32 2147483648, %v663_v59  ;;  %v678_v10 = vand.u32 2147483647, %v663_v59 }
 0x3ef   : > { %v700_v18 = vrot.slane %v699_v15, 2 }
 0x3f0   : > { %v681_v11 = vor.u32 1.1754944e-38, %v680_v1  ;;  %vm679_vm12 = vcmp.eq.f32.partialorder %v678_v10, 8.507059e+37 }
 0x3f1   : > { %v548_v0 = vpop.f32.mrf.mxu0  ;;  %v583_v4 = vpop.f32.mrf.mxu1  ;;  %v701_v8 = vmin.f32 %v699_v15, %v700_v18 }
 0x3f2   : > { %v478_v16 = vpop.f32.mrf.mxu2  ;;  %v513_v29 = vpop.f32.mrf.mxu3 }
 0x3f3   : > { %v481_v28 = vadd.f32 %v478_v16, %v445_v27  ;;  %v702_v23 = vrot.slane %v701_v8, 1 }
 0x3f4   : > { %v992_v60 = vpop.eup %991 }
 0x3f5   : > { %v516_v30 = vadd.f32 %v513_v29, %v481_v28  ;;  %v670_v61 = vmul.f32 %v992_v60, %v663_v59  ;;  %vm675_vm13 = vweird.f32 %v992_v60  ;;  %v703_v24 = vmin.f32 %v701_v8, %v702_v23 }
 0x3f6   : > { %vm676_vm0 = vmor %vm674_vm9, %vm675_vm13 }
 0x3f7   : > { %v551_v5 = vadd.f32 %v548_v0, %v516_v30  ;;  %v671_v62 = vsub.f32 1.0, %v670_v61 }
 0x3f9   : > { %v586_v31 = vadd.f32 %v583_v4, %v551_v5  ;;  %v672_v63 = vmul.f32 %v992_v60, %v671_v62 }
 0x3fa   : > { %v618_v32 = vpop.f32.mrf.mxu2  ;;  %v653_v34 = vpop.f32.mrf.mxu3 }
 0x3fb   : > { %v621_v33 = vadd.f32 %v618_v32, %v586_v31  ;;  %v673_v6 = vadd.f32 %v992_v60, %v672_v63 }
 0x3fd   : > { %v656_v35 = vadd.f32 %v653_v34, %v621_v33  ;;  %v677_v17 = vsel %vm676_vm0, %v992_v60, %v673_v6 }
 0x3fe   : > { %v682_v47 = vsel %vm679_vm12, %v681_v11, %v677_v17 }
 0x3ff   : > { %v664_v36 = vand.u32 2147483647, %v656_v35 }
 0x401   : > { %v666_v37 = vsel %vm665_vm7, %v664_v36, 0.0 }
 0x402   : > { %667 = vadd.xlane.f32.xlu1 %v666_v37 }
 0x475   : > { %v668_v12 = vpop.xlane.xlu1 %667 }
 0x476   : > { %v683_v9 = vmul.f32 %v682_v47, %v668_v12 }
 0x478   : > { %v685_v42 = vsel %vm684_vm14, %v683_v9, 0.0 }
 0x479   : > { %686 = vadd.xlane.f32.xlu2 %v685_v42 }
 0x4ec   : > { %v687_v2 = vpop.xlane.xlu2 %686 }
 0x4ed   : > { %v688_v19 = vrot.slane %v687_v2, 4 }
 0x4ef   : > { %v689_v20 = vadd.f32 %v688_v19, %v687_v2 }
 0x4f1   : > { %v690_v21 = vrot.slane %v689_v20, 2 }
 0x4f3   : > { %v691_v22 = vadd.f32 %v690_v21, %v689_v20 }
 0x4f5   : > { %v692_v7 = vrot.slane %v691_v22, 1 }
 0x4f7   : > { %v693_v3 = vadd.f32 %v692_v7, %v691_v22 }
 0x4f9   : > { %901 = vpush %v693_v3 }
 0x4fa   : > { %903 = vpush %v703_v24 }
 0x52a   : > { %s902_s16 = spop %901 }
 0x52b   : > { %v705_v45 = vstv %s902_s16  ;;  %s904_s24 = spop %903 }
 0x52c   : > { %706 = vst [vmem:[%s184_s11] sm:$0xff] %v705_v45  ;;  %v707_v25 = vstv %s904_s24 }
 0x52d   : > { %708 = vst [vmem:[%s191_s6] sm:$0xff] %v707_v25 }
 0x52e   : > { %1080 = shalt.err (!%p1077_p7)
}
 0x52f   : > { %913 = dma.vmem_to_hbm [thread:$0]  (%p1229_p5), %s728_s17, 128, %s730_s19, %s710_s25  }
 0x530   : > { %s715_s6 = scalar_lea.sflag [#allocation9], %s1501_s27  ;;  %s1095_s9 = sshra.s32 %s1513_s20, 4  ;;  %s1096_s9 = int_to_ptr.hbm [resolvable:$true] %s1095_s9 }
 0x531   : > { %s1097_s10 = scalar_lea.hbm %s1096_s9, 8  ;;  %s1101_s24 = scalar_lea.hbm %s1560_s3, 16 }
 0x532   : > { %p1098_p8 = scmp.ne.s32.totalorder %s1096_s9, %s1097_s10  ;;  %p1102_p11 = scmp.lt.s32.totalorder %s1096_s9, %s1560_s3 }
 0x533   : > { %p1103_p12 = scmp.lt.s32.totalorder %s1101_s24, %s1097_s10 }
 0x534   : > { %p1099_p9 = pnand %p1098_p8, %p1229_p5 }
 0x535   : > { %p1104_p13 = por %p1103_p12, %p1102_p11 }
 0x536   : > { %p1100_p10 = pneg %p1099_p9 }
 0x538   : > { %p1105_p0 = pnand %p1104_p13, %p1100_p10 }
 0x53a   : > { %1108 = shalt.err (!%p1105_p0)
}
 0x53b   : > { %914 = dma.vmem_to_hbm [thread:$0]  (%p1229_p5), %s1511_s7, 128, %s1513_s20, %s715_s6  }
 0x53c PF: > { %p935_p1 = scmp.ge.s32.totalorder %s1155_s15, 2  ;;  %s755_s27 = sand.u32 1, %s1143_s12  }
 0x53d   : > { %s756_s17 = scalar_lea.sflag [#allocation4], %s755_s27 }
 0x53e   : > { %p925_p2 = pnand %p935_p1, %p1233_p6 }
 0x540   : > { %p926_p3 = pneg %p925_p2 }
 0x542   : > { %1134 = dma.done.wait (%p926_p3), %s756_s17, 128  }
 0x543   : > { %1136 = vsyncadd (%p926_p3), %s756_s17, 4294967168  ;;  %s766_s19 = scalar_lea.sflag [#allocation9], %s755_s27 }
 0x544   : > { %1138 = dma.done.wait (%p926_p3), %s766_s19, 128  }
 0x545   : > { %1140 = vsyncadd (%p926_p3), %s766_s19, 4294967168  ;;  %p19_p5 = scmp.ge.s32.totalorder %s1216_s18, 4   ;;  %s1586_s12 = smov %s1147_s13 }
 0x546   : > { %s1587_s13 = smov %s1151_s14  ;;  %s1588_s14 = smov %s1227_s21 }
 0x547   : > { %s1589_s15 = smov %s1216_s18  ;;  %21 = sbr.rel (!%p19_p5) target bundleno = 7 (0x7), region = 87 }
 0x54c   :  { %772 = vsyncpa [#allocation3], 1 }
 0x54d   :  { %774 = vsyncpa [#allocation3 + $0x1], 1 }
 0x54e   :  { %775 = vsyncpa [#allocation6], 1 }
 0x54f   :  { %776 = vsyncpa [#allocation4], 1 }
 0x550   :  { %778 = vsyncpa [#allocation4 + $0x1], 1 }
 0x551   :  { %779 = vsyncpa [#allocation9], 1 }
 0x552   :  { %781 = vsyncpa [#allocation9 + $0x1], 1 }

</bundles_post_ra>
